<compile_context>
chip_gen: v7x
topology: tpu7x:2x2x1
jax: 0.10.0
libtpu: 0.0.40
codegen_flags: <defaults>
</compile_context>

<pallas_src>
import jax
import jax.numpy as jnp
from jax.experimental import pallas as pl
from jax.experimental.pallas import tpu as pltpu


def _round_up(x: int, m: int) -> int:
    return (x + m - 1) // m * m


def _choose_block_b(batch: int) -> tuple[int, int]:
    """Batch tile: >=8 sublanes, <=512 rows, and >=2 grid steps once the batch
    is big enough (so both v7x TensorCores are used; harmless on v5e/v6e)."""
    b_pad = _round_up(batch, 8)
    block = min(512, b_pad)
    if b_pad >= 16:
        block = min(block, _round_up(pl.cdiv(b_pad, 2), 8))
    b_pad = _round_up(b_pad, block)
    return b_pad, block


def mlp_softmax_kernel(x_ref, w1_ref, b1_ref, w2_ref, b2_ref, o_ref):
    # fc1: cast the f32 x tile to bf16 in-register (cheap VPU cast, hidden
    # under the matmul); MXU with f32 accumulation; bias + ReLU in f32.
    x = x_ref[...].astype(jnp.bfloat16)
    h = jnp.dot(x, w1_ref[...], preferred_element_type=jnp.float32)
    h = jnp.maximum(h + b1_ref[...], 0.0)

    # TODO(synk): dropout(p=0.1) is identity at inference; training-mode
    # (stochastic) dropout is not implemented here.

    # fc2: bf16 MXU inputs, f32 accumulation. Padded output columns are
    # masked via b2 pre-baked to -1e30 (padded w2 rows are zero), so no
    # in-kernel iota/where is needed.
    logits = jnp.dot(h.astype(w2_ref.dtype), w2_ref[...],
                     preferred_element_type=jnp.float32)
    logits = logits + b2_ref[...]

    # Numerically stable softmax over dim=1. exp(-1e30 - m) == 0 on pad cols.
    # Exact reciprocal: denom is only (block_b, 1), exactness is free.
    m = jnp.max(logits, axis=1, keepdims=True)
    e = jnp.exp(logits - m)
    denom = jnp.sum(e, axis=1, keepdims=True)
    o_ref[...] = (e * pl.reciprocal(denom)).astype(o_ref.dtype)


@jax.jit
def cifar_perceptron_forward(x_nchw, w1, b1, w2, b2):
    """x_nchw: (B, C, H, W) f32. w1: (D, Hid), b1: (1, Hid), w2: (Hid, O),
    b2: (1, O) — weights pre-transposed to (in, out). Returns (B, O) probs."""
    B = x_nchw.shape[0]
    D = x_nchw.shape[1] * x_nchw.shape[2] * x_nchw.shape[3]
    hid = w1.shape[1]
    out = w2.shape[1]

    b_pad, block_b = _choose_block_b(B)
    hid_pad = _round_up(hid, 8)     # sublane-align only; no 4x w1 blow-up
    out_pad = _round_up(out, 128)   # keep the output store lane-dense

    # flatten (== torch.flatten(x, 1)); keep f32 — cast happens in-kernel.
    # Only pad batch rows (tiny for small B; a multiple of block_b for big B).
    x_p = jnp.pad(x_nchw.reshape(B, D), ((0, b_pad - B), (0, 0)))

    w1_p = jnp.pad(w1, ((0, 0), (0, hid_pad - hid))).astype(jnp.bfloat16)
    b1_p = jnp.pad(b1, ((0, 0), (0, hid_pad - hid))).astype(jnp.float32)
    w2_p = jnp.pad(w2, ((0, hid_pad - hid),
                        (0, out_pad - out))).astype(jnp.bfloat16)
    # Bake the pad-column softmax mask into b2: padded w2 rows are zero, so
    # padded logits equal b2 there; -1e30 -> exp() == 0.
    b2_p = jnp.full((1, out_pad), -1e30, jnp.float32)
    b2_p = b2_p.at[:, :out].set(b2.astype(jnp.float32))

    grid = (b_pad // block_b,)

    cost = pl.CostEstimate(
        flops=2 * b_pad * D * hid_pad + 2 * b_pad * hid_pad * out_pad,
        transcendentals=b_pad * out_pad,
        bytes_accessed=(x_p.size * 4 + w1_p.size * 2 + w2_p.size * 2
                        + b1_p.size * 4 + b2_p.size * 4 + b_pad * out_pad * 4),
    )

    # NOTE: w1/w2 are resident (constant index_map). If this is ever scaled up
    # (large hidden / block_b) on v7x's 64 MiB VMEM, mark their specs with
    # pipeline_mode=pl.Buffered(1) to avoid double-buffering resident weights.
    probs_padded = pl.pallas_call(
        mlp_softmax_kernel,
        out_shape=jax.ShapeDtypeStruct((b_pad, out_pad), jnp.float32),
        grid=grid,
        in_specs=[
            pl.BlockSpec((block_b, D), lambda i: (i, 0)),        # x tile (f32)
            pl.BlockSpec((D, hid_pad), lambda i: (0, 0)),        # w1 (resident)
            pl.BlockSpec((1, hid_pad), lambda i: (0, 0)),        # b1
            pl.BlockSpec((hid_pad, out_pad), lambda i: (0, 0)),  # w2 (resident)
            pl.BlockSpec((1, out_pad), lambda i: (0, 0)),        # b2 (mask baked)
        ],
        out_specs=pl.BlockSpec((block_b, out_pad), lambda i: (i, 0)),
        compiler_params=pltpu.CompilerParams(
            dimension_semantics=("parallel",),
        ),
        cost_estimate=cost,
    )(x_p, w1_p, b1_p, w2_p, b2_p)

    # Strip pad rows / lanes; fuses under jit (in-kernel store stays lane-dense).
    return probs_padded[:B, :out]


def init_linear_params(key, fan_in, fan_out):
    """Deterministic init matching torch.nn.Linear's U(-1/sqrt(fan_in), ...).
    Returns (W, b) with W already transposed to (fan_in, fan_out)."""
    kw, kb = jax.random.split(key)
    bound = 1.0 / jnp.sqrt(jnp.float32(fan_in))
    w = jax.random.uniform(kw, (fan_in, fan_out), jnp.float32, -bound, bound)
    b = jax.random.uniform(kb, (1, fan_out), jnp.float32, -bound, bound)
    return w, b


def reference_forward(x_nchw, w1, b1, w2, b2):
    """Pure-JAX f32 reference of the PyTorch forward (eval mode)."""
    B = x_nchw.shape[0]
    x = x_nchw.reshape(B, -1)
    h = jnp.maximum(x @ w1 + b1, 0.0)
    logits = h @ w2 + b2
    return jax.nn.softmax(logits, axis=1)


if __name__ == "__main__":
    # Small shapes consistent with the module: batch=2, channels=4, spatial=16
    B, C, H, W = 2, 4, 16, 16
    input_size = C * H * W      # 1024
    hidden_size = 32
    output_size = 10

    key = jax.random.PRNGKey(0)
    kx, k1, k2 = jax.random.split(key, 3)

    x = jax.random.normal(kx, (B, C, H, W), jnp.float32)
    w1, b1 = init_linear_params(k1, input_size, hidden_size)
    w2, b2 = init_linear_params(k2, hidden_size, output_size)

    out = cifar_perceptron_forward(x, w1, b1, w2, b2)
    out = jax.block_until_ready(out)

    # Sanity: shape, softmax rows sum to ~1 (exact normalization now),
    # and matches the f32 reference to bf16-MXU tolerance.
    assert out.shape == (B, output_size)
    assert bool(jnp.allclose(jnp.sum(out, axis=1), 1.0, atol=1e-3))
    ref = reference_forward(x, w1, b1, w2, b2)
    assert bool(jnp.allclose(out, ref, atol=3e-2))

    print("KERNEL_OK")
</pallas_src>

<mosaic_0001>
module attributes {stable_mosaic.version = 11 : i64} {
  func.func @mlp_softmax_kernel(%arg0: i32, %arg1: memref<8x1024xf32, #tpu.memory_space<vmem>>, %arg2: memref<1024x32xbf16, #tpu.memory_space<vmem>>, %arg3: memref<1x32xf32, #tpu.memory_space<vmem>>, %arg4: memref<32x128xbf16, #tpu.memory_space<vmem>>, %arg5: memref<1x128xf32, #tpu.memory_space<vmem>>, %arg6: memref<8x128xf32, #tpu.memory_space<vmem>>) attributes {dimension_semantics = [#tpu.dimension_semantics<parallel>], iteration_bounds = array<i64: 1>, scalar_prefetch = 0 : i64, scratch_operands = 0 : i64, tpu.core_type = #tpu.core_type<tc>, window_params = [{transform_indices = @transform_0, window_bounds = array<i64: 8, 1024>}, {pipeline_mode = #tpu.pipeline_mode<synchronous>, transform_indices = @transform_1, window_bounds = array<i64: 1024, 32>}, {pipeline_mode = #tpu.pipeline_mode<synchronous>, transform_indices = @transform_2, window_bounds = array<i64: 1, 32>}, {pipeline_mode = #tpu.pipeline_mode<synchronous>, transform_indices = @transform_3, window_bounds = array<i64: 32, 128>}, {pipeline_mode = #tpu.pipeline_mode<synchronous>, transform_indices = @transform_4, window_bounds = array<i64: 1, 128>}, {transform_indices = @transform_5, window_bounds = array<i64: 8, 128>}]} {
    %c0 = arith.constant 0 : index
    %c0_0 = arith.constant 0 : index
    %0 = vector.load %arg1[%c0, %c0_0] : memref<8x1024xf32, #tpu.memory_space<vmem>>, vector<8x1024xf32>
    %1 = arith.truncf %0 : vector<8x1024xf32> to vector<8x1024xbf16>
    %c0_1 = arith.constant 0 : index
    %c0_2 = arith.constant 0 : index
    %2 = vector.load %arg2[%c0_1, %c0_2] : memref<1024x32xbf16, #tpu.memory_space<vmem>>, vector<1024x32xbf16>
    %cst = arith.constant dense<0.000000e+00> : vector<8x32xf32>
    %3 = tpu.matmul %1, %2, %cst {dimension_numbers = #tpu.dot_dimension_numbers<[1], [0], [0], [1], [0, 0, 1, 1], [], []>} : vector<8x1024xbf16>, vector<1024x32xbf16>, vector<8x32xf32> -> vector<8x32xf32>
    %c0_3 = arith.constant 0 : index
    %c0_4 = arith.constant 0 : index
    %4 = vector.load %arg3[%c0_3, %c0_4] : memref<1x32xf32, #tpu.memory_space<vmem>>, vector<1x32xf32>
    %5 = vector.broadcast %4 : vector<1x32xf32> to vector<8x32xf32>
    %6 = arith.addf %3, %5 : vector<8x32xf32>
    %cst_5 = arith.constant 0.000000e+00 : f32
    %7 = vector.broadcast %cst_5 : f32 to vector<8x32xf32>
    %8 = arith.maximumf %6, %7 : vector<8x32xf32>
    %9 = arith.truncf %8 : vector<8x32xf32> to vector<8x32xbf16>
    %c0_6 = arith.constant 0 : index
    %c0_7 = arith.constant 0 : index
    %10 = vector.load %arg4[%c0_6, %c0_7] : memref<32x128xbf16, #tpu.memory_space<vmem>>, vector<32x128xbf16>
    %cst_8 = arith.constant dense<0.000000e+00> : vector<8x128xf32>
    %11 = tpu.matmul %9, %10, %cst_8 {dimension_numbers = #tpu.dot_dimension_numbers<[1], [0], [0], [1], [0, 0, 1, 1], [], []>} : vector<8x32xbf16>, vector<32x128xbf16>, vector<8x128xf32> -> vector<8x128xf32>
    %c0_9 = arith.constant 0 : index
    %c0_10 = arith.constant 0 : index
    %12 = vector.load %arg5[%c0_9, %c0_10] : memref<1x128xf32, #tpu.memory_space<vmem>>, vector<1x128xf32>
    %13 = vector.broadcast %12 : vector<1x128xf32> to vector<8x128xf32>
    %14 = arith.addf %11, %13 : vector<8x128xf32>
    %cst_11 = arith.constant dense<0xFF800000> : vector<8xf32>
    %15 = vector.multi_reduction <maximumf>, %14, %cst_11 [1] : vector<8x128xf32> to vector<8xf32>
    %16 = vector.shape_cast %15 : vector<8xf32> to vector<8x1xf32>
    %17 = vector.broadcast %16 : vector<8x1xf32> to vector<8x128xf32>
    %18 = arith.subf %14, %17 : vector<8x128xf32>
    %19 = math.exp %18 : vector<8x128xf32>
    %cst_12 = arith.constant dense<0.000000e+00> : vector<8xf32>
    %20 = vector.multi_reduction <add>, %19, %cst_12 [1] : vector<8x128xf32> to vector<8xf32>
    %21 = vector.shape_cast %20 : vector<8xf32> to vector<8x1xf32>
    %22 = tpu.reciprocal %21 : vector<8x1xf32> -> vector<8x1xf32>
    %23 = vector.broadcast %22 : vector<8x1xf32> to vector<8x128xf32>
    %24 = arith.mulf %19, %23 : vector<8x128xf32>
    %c0_13 = arith.constant 0 : index
    %c0_14 = arith.constant 0 : index
    %25 = vector.load %arg6[%c0_13, %c0_14] : memref<8x128xf32, #tpu.memory_space<vmem>>, vector<8x128xf32>
    tpu.vector_store %arg6[%c0_13, %c0_14], %24 {strides = array<i32>} : memref<8x128xf32, #tpu.memory_space<vmem>>, vector<8x128xf32>,
    return
  }
  func.func @transform_0(%arg0: i32) -> (i32, i32) {
    %c0_i32 = arith.constant 0 : i32
    %c0_i32_0 = arith.constant 0 : i32
    return %arg0, %c0_i32 : i32, i32
  }
  func.func @transform_1(%arg0: i32) -> (i32, i32) {
    %c0_i32 = arith.constant 0 : i32
    %c0_i32_0 = arith.constant 0 : i32
    %c0_i32_1 = arith.constant 0 : i32
    return %c0_i32, %c0_i32_0 : i32, i32
  }
  func.func @transform_2(%arg0: i32) -> (i32, i32) {
    %c0_i32 = arith.constant 0 : i32
    %c0_i32_0 = arith.constant 0 : i32
    %c0_i32_1 = arith.constant 0 : i32
    return %c0_i32, %c0_i32_0 : i32, i32
  }
  func.func @transform_3(%arg0: i32) -> (i32, i32) {
    %c0_i32 = arith.constant 0 : i32
    %c0_i32_0 = arith.constant 0 : i32
    %c0_i32_1 = arith.constant 0 : i32
    return %c0_i32, %c0_i32_0 : i32, i32
  }
  func.func @transform_4(%arg0: i32) -> (i32, i32) {
    %c0_i32 = arith.constant 0 : i32
    %c0_i32_0 = arith.constant 0 : i32
    %c0_i32_1 = arith.constant 0 : i32
    return %c0_i32, %c0_i32_0 : i32, i32
  }
  func.func @transform_5(%arg0: i32) -> (i32, i32) {
    %c0_i32 = arith.constant 0 : i32
    %c0_i32_0 = arith.constant 0 : i32
    return %arg0, %c0_i32 : i32, i32
  }
}

</mosaic_0001>

<bundles_post_ra>
// kernel: cifar_perceptron_forward.1
= control target key start
LH: loop header
LB: loop body
LE: loop exit
PB: predicated region body
PF: predicated region fallthrough
CT: control target
= control target key end

     0   :  { %vm1040_vm0 = vmmov 0   ;;  %vm741_vm1 = vcmask 261120   ;;  %s1302_s1 = inlined_call_operand.vmem [shape: bf16[1024,32], index: 1, kind: input, shape index: {}]   ;;  %s1303_s0 = inlined_call_operand.vmem [shape: f32[8,1024], index: 0, kind: input, shape index: {}]   ;;  %s1304_s3 = inlined_call_operand.vmem [shape: bf16[32,128], index: 3, kind: input, shape index: {}]   ;;  %s1305_s2 = inlined_call_operand.vmem [shape: f32[1,32], index: 2, kind: input, shape index: {}]   ;;  %s1306_s4 = inlined_call_operand.vmem [shape: f32[1,128], index: 4, kind: input, shape index: {}]   ;;  %s1307_s5 = inlined_call_operand.vmem [shape: f32[8,128], index: 5, kind: output, shape index: {}]  }
   0x1   :  { %v969_v0 = vld [vmem:[%s1302_s1 + $0x40] sm:$0xff]   ;;  %v973_v4 = vld [vmem:[%s1302_s1 + $0x48] sm:$0xff]   ;;  %v977_v8 = vld [vmem:[%s1302_s1 + $0x50] sm:$0xff]  }
   0x2   :  { %v970_v1 = vld [vmem:[%s1302_s1 + $0xc0] sm:$0xff]   ;;  %868 = vmatprep.subr.bf16.mxu0 %v969_v0  ;;  %v974_v5 = vld [vmem:[%s1302_s1 + $0xc8] sm:$0xff]   ;;  %v978_v9 = vld [vmem:[%s1302_s1 + $0xd0] sm:$0xff]  }
   0x3   :  { %v971_v2 = vld [vmem:[%s1302_s1] sm:$0xff]   ;;  %890 = vmatprep.subr.bf16.mxu1 %v970_v1  ;;  %v975_v6 = vld [vmem:[%s1302_s1 + $0x8] sm:$0xff]   ;;  %v979_v10 = vld [vmem:[%s1302_s1 + $0x10] sm:$0xff]  }
   0x4   :  { %v972_v3 = vld [vmem:[%s1302_s1 + $0x80] sm:$0xff]   ;;  %869 = vmatpush3.bf16.msra.mxu0 %v971_v2  ;;  %v976_v7 = vld [vmem:[%s1302_s1 + $0x88] sm:$0xff]   ;;  %v980_v11 = vld [vmem:[%s1302_s1 + $0x90] sm:$0xff]  }
   0x5   :  { %891 = vmatpush3.bf16.msra.mxu1 %v972_v3  ;;  %870 = vmatprep.subr.bf16.mxu0 %v973_v4  ;;  %v981_v12 = vld [vmem:[%s1302_s1 + $0x58] sm:$0xff]   ;;  %v985_v16 = vld [vmem:[%s1302_s1 + $0x60] sm:$0xff]   ;;  %v989_v20 = vld [vmem:[%s1302_s1 + $0x68] sm:$0xff]  }
   0x6   :  { %892 = vmatprep.subr.bf16.mxu1 %v974_v5  ;;  %v982_v13 = vld [vmem:[%s1302_s1 + $0xd8] sm:$0xff]   ;;  %v986_v17 = vld [vmem:[%s1302_s1 + $0xe0] sm:$0xff]   ;;  %v990_v21 = vld [vmem:[%s1302_s1 + $0xe8] sm:$0xff]  }
   0x7   :  { %v983_v14 = vld [vmem:[%s1302_s1 + $0x18] sm:$0xff]   ;;  %v987_v18 = vld [vmem:[%s1302_s1 + $0x20] sm:$0xff]   ;;  %v991_v22 = vld [vmem:[%s1302_s1 + $0x28] sm:$0xff]  }
   0x8   :  { %871 = vmatpush3.bf16.msra.mxu0 %v975_v6  ;;  %v984_v15 = vld [vmem:[%s1302_s1 + $0x98] sm:$0xff]   ;;  %v988_v19 = vld [vmem:[%s1302_s1 + $0xa0] sm:$0xff]   ;;  %v992_v23 = vld [vmem:[%s1302_s1 + $0xa8] sm:$0xff]  }
   0x9   :  { %893 = vmatpush3.bf16.msra.mxu1 %v976_v7  ;;  %872 = vmatprep.subr.bf16.mxu0 %v977_v8  ;;  %v993_v24 = vld [vmem:[%s1302_s1 + $0x70] sm:$0xff]   ;;  %v997_v28 = vld [vmem:[%s1302_s1 + $0x78] sm:$0xff]   ;;  %v22_v32 = vld [vmem:[%s1303_s0 + $0x8] sm:$0xff] }
   0xa   :  { %894 = vmatprep.subr.bf16.mxu1 %v978_v9  ;;  %v994_v25 = vld [vmem:[%s1302_s1 + $0xf0] sm:$0xff]   ;;  %v998_v29 = vld [vmem:[%s1302_s1 + $0xf8] sm:$0xff]   ;;  %v21_v34 = vld [vmem:[%s1303_s0] sm:$0xff]  ;;  %v30_v35 = vpack.c.bf16 %v22_v32, %v22_v32 }
   0xb   :  { %v995_v26 = vld [vmem:[%s1302_s1 + $0x30] sm:$0xff]   ;;  %v999_v30 = vld [vmem:[%s1302_s1 + $0x38] sm:$0xff]   ;;  %v29_v37 = vpack.c.bf16 %v21_v34, %v21_v34  ;;  %v1001_v40 = vld [vmem:[%s1302_s1 + $0x140] sm:$0xff]  }
   0xc   :  { %873 = vmatpush3.bf16.msra.mxu0 %v979_v10  ;;  %v996_v27 = vld [vmem:[%s1302_s1 + $0xb0] sm:$0xff]   ;;  %v1000_v31 = vld [vmem:[%s1302_s1 + $0xb8] sm:$0xff]   ;;  %588 = vmatprep.mubr.bf16.mxu0 %v30_v35  ;;  %v1002_v41 = vld [vmem:[%s1302_s1 + $0x1c0] sm:$0xff]  }
   0xd   :  { %895 = vmatpush3.bf16.msra.mxu1 %v980_v11  ;;  %874 = vmatprep.subr.bf16.mxu0 %v981_v12  ;;  %v24_v33 = vld [vmem:[%s1303_s0 + $0x18] sm:$0xff]  ;;  %v23_v38 = vld [vmem:[%s1303_s0 + $0x10] sm:$0xff]  ;;  %v1003_v42 = vld [vmem:[%s1302_s1 + $0x100] sm:$0xff]  }
   0xe   :  { %896 = vmatprep.subr.bf16.mxu1 %v982_v13  ;;  %v32_v36 = vpack.c.bf16 %v24_v33, %v24_v33  ;;  %v31_v39 = vpack.c.bf16 %v23_v38, %v23_v38  ;;  %v1004_v43 = vld [vmem:[%s1302_s1 + $0x180] sm:$0xff]   ;;  %v1005_v44 = vld [vmem:[%s1302_s1 + $0x148] sm:$0xff]   ;;  %v1009_v48 = vld [vmem:[%s1302_s1 + $0x150] sm:$0xff]  }
   0xf   :  { %v1006_v45 = vld [vmem:[%s1302_s1 + $0x1c8] sm:$0xff]   ;;  %v1010_v49 = vld [vmem:[%s1302_s1 + $0x1d0] sm:$0xff]   ;;  %v1013_v52 = vld [vmem:[%s1302_s1 + $0x158] sm:$0xff]  }
  0x10   :  { %875 = vmatpush3.bf16.msra.mxu0 %v983_v14  ;;  %628 = vmatprep.mubr.bf16.mxu1 %v32_v36  ;;  %v1007_v46 = vld [vmem:[%s1302_s1 + $0x108] sm:$0xff]   ;;  %v1011_v50 = vld [vmem:[%s1302_s1 + $0x110] sm:$0xff]   ;;  %v1014_v53 = vld [vmem:[%s1302_s1 + $0x1d8] sm:$0xff]  }
  0x11   :  { %897 = vmatpush3.bf16.msra.mxu1 %v984_v15  ;;  %876 = vmatprep.subr.bf16.mxu0 %v985_v16  ;;  %v1008_v47 = vld [vmem:[%s1302_s1 + $0x188] sm:$0xff]   ;;  %v1012_v51 = vld [vmem:[%s1302_s1 + $0x190] sm:$0xff]   ;;  %v1015_v54 = vld [vmem:[%s1302_s1 + $0x118] sm:$0xff]  }
  0x12   :  { %898 = vmatprep.subr.bf16.mxu1 %v986_v17  ;;  %v1016_v55 = vld [vmem:[%s1302_s1 + $0x198] sm:$0xff]   ;;  %v1017_v56 = vld [vmem:[%s1302_s1 + $0x160] sm:$0xff]   ;;  %v1021_v60 = vld [vmem:[%s1302_s1 + $0x168] sm:$0xff]   ;;  %v1039_v17 = vmov 0.0  }
  0x13   :  { %v1018_v57 = vld [vmem:[%s1302_s1 + $0x1e0] sm:$0xff]   ;;  %v1022_v61 = vld [vmem:[%s1302_s1 + $0x1e8] sm:$0xff]   ;;  %v1025_v0 = vld [vmem:[%s1302_s1 + $0x170] sm:$0xff]  }
  0x14   :  { %877 = vmatpush3.bf16.msra.mxu0 %v987_v18  ;;  %v1019_v58 = vld [vmem:[%s1302_s1 + $0x120] sm:$0xff]   ;;  %v1023_v62 = vld [vmem:[%s1302_s1 + $0x128] sm:$0xff]   ;;  %v1026_v1 = vld [vmem:[%s1302_s1 + $0x1f0] sm:$0xff]  }
  0x15   :  { %899 = vmatpush3.bf16.msra.mxu1 %v988_v19  ;;  %878 = vmatprep.subr.bf16.mxu0 %v989_v20  ;;  %v1020_v59 = vld [vmem:[%s1302_s1 + $0x1a0] sm:$0xff]   ;;  %v1024_v63 = vld [vmem:[%s1302_s1 + $0x1a8] sm:$0xff]   ;;  %v1027_v2 = vld [vmem:[%s1302_s1 + $0x130] sm:$0xff]  }
  0x16   :  { %900 = vmatprep.subr.bf16.mxu1 %v990_v21  ;;  %v1028_v3 = vld [vmem:[%s1302_s1 + $0x1b0] sm:$0xff]   ;;  %v1029_v4 = vld [vmem:[%s1302_s1 + $0x178] sm:$0xff]   ;;  %v26_v8 = vld [vmem:[%s1303_s0 + $0x28] sm:$0xff] }
  0x17   :  { %v1030_v5 = vld [vmem:[%s1302_s1 + $0x1f8] sm:$0xff]   ;;  %v34_v10 = vpack.c.bf16 %v26_v8, %v26_v8  ;;  %v25_v12 = vld [vmem:[%s1303_s0 + $0x20] sm:$0xff]  ;;  %v27_v13 = vld [vmem:[%s1303_s0 + $0x30] sm:$0xff] }
  0x18   :  { %879 = vmatpush3.bf16.msra.mxu0 %v991_v22  ;;  %v1031_v6 = vld [vmem:[%s1302_s1 + $0x138] sm:$0xff]   ;;  %v33_v14 = vpack.c.bf16 %v25_v12, %v25_v12  ;;  %v35_v15 = vpack.c.bf16 %v27_v13, %v27_v13  ;;  %v1033_v16 = vld [vmem:[%s1304_s3] sm:$0xff]   ;;  %v1034_v18 = vld [vmem:[%s1304_s3 + $0x8] sm:$0xff]  }
  0x19   :  { %901 = vmatpush3.bf16.msra.mxu1 %v992_v23  ;;  %880 = vmatprep.subr.bf16.mxu0 %v993_v24  ;;  %v1032_v7 = vld [vmem:[%s1302_s1 + $0x1b8] sm:$0xff]   ;;  %v799_v21 = vld [vmem:[%s1305_s2] ss:$0 sm:$0xff] }
  0x1a   :  { %902 = vmatprep.subr.bf16.mxu1 %v994_v25  ;;  %v28_v9 = vld [vmem:[%s1303_s0 + $0x38] sm:$0xff] }
  0x1b   :  { %v36_v11 = vpack.c.bf16 %v28_v9, %v28_v9 }
  0x1c   :  { %881 = vmatpush3.bf16.msra.mxu0 %v995_v26 }
  0x1d   :  { %903 = vmatpush3.bf16.msra.mxu1 %v996_v27  ;;  %882 = vmatprep.subr.bf16.mxu0 %v997_v28 }
  0x1e   :  { %904 = vmatprep.subr.bf16.mxu1 %v998_v29 }
  0x20   :  { %883 = vmatpush3.bf16.msra.mxu0 %v999_v30 }
  0x21   :  { %905 = vmatpush3.bf16.msra.mxu1 %v1000_v31  ;;  %912 = vmatprep.subr.bf16.mxu0 %v1001_v40 }
  0x22   :  { %934 = vmatprep.subr.bf16.mxu1 %v1002_v41 }
  0x23   :  { %589 = vmatmul.mubr.bf16.vlgmr.msra.gmra.mrb[0].mxu0 %v29_v37 }
  0x24   :  { %629 = vmatmul.mubr.bf16.vlgmr.msra.gmra.mrb[0].mxu1 %v31_v39  ;;  %913 = vmatpush3.bf16.msra.mxu0 %v1003_v42 }
  0x25   :  { %935 = vmatpush3.bf16.msra.mxu1 %v1004_v43  ;;  %914 = vmatprep.subr.bf16.mxu0 %v1005_v44 }
  0x26   :  { %936 = vmatprep.subr.bf16.mxu1 %v1006_v45  ;;  %668 = vmatprep.mubr.bf16.mxu0 %v34_v10 }
  0x27   :  { %708 = vmatprep.mubr.bf16.mxu1 %v36_v11 }
  0x28   :  { %915 = vmatpush3.bf16.msra.mxu0 %v1007_v46  ;;  %v864_v46 = vld [vmem:[%s1306_s4] ss:$0 sm:$0xff] }
  0x29   :  { %937 = vmatpush3.bf16.msra.mxu1 %v1008_v47  ;;  %916 = vmatprep.subr.bf16.mxu0 %v1009_v48 }
  0x2a   :  { %938 = vmatprep.subr.bf16.mxu1 %v1010_v49 }
  0x2c   :  { %917 = vmatpush3.bf16.msra.mxu0 %v1011_v50 }
  0x2d   :  { %939 = vmatpush3.bf16.msra.mxu1 %v1012_v51  ;;  %918 = vmatprep.subr.bf16.mxu0 %v1013_v52 }
  0x2e   :  { %940 = vmatprep.subr.bf16.mxu1 %v1014_v53 }
  0x30   :  { %919 = vmatpush3.bf16.msra.mxu0 %v1015_v54 }
  0x31   :  { %941 = vmatpush3.bf16.msra.mxu1 %v1016_v55  ;;  %920 = vmatprep.subr.bf16.mxu0 %v1017_v56 }
  0x32   :  { %942 = vmatprep.subr.bf16.mxu1 %v1018_v57 }
  0x34   :  { %921 = vmatpush3.bf16.msra.mxu0 %v1019_v58 }
  0x35   :  { %943 = vmatpush3.bf16.msra.mxu1 %v1020_v59  ;;  %922 = vmatprep.subr.bf16.mxu0 %v1021_v60 }
  0x36   :  { %944 = vmatprep.subr.bf16.mxu1 %v1022_v61 }
  0x38   :  { %923 = vmatpush3.bf16.msra.mxu0 %v1023_v62 }
  0x39   :  { %945 = vmatpush3.bf16.msra.mxu1 %v1024_v63  ;;  %924 = vmatprep.subr.bf16.mxu0 %v1025_v0 }
  0x3a   :  { %946 = vmatprep.subr.bf16.mxu1 %v1026_v1 }
  0x3c   :  { %925 = vmatpush3.bf16.msra.mxu0 %v1027_v2 }
  0x3d   :  { %947 = vmatpush3.bf16.msra.mxu1 %v1028_v3  ;;  %926 = vmatprep.subr.bf16.mxu0 %v1029_v4 }
  0x3e   :  { %948 = vmatprep.subr.bf16.mxu1 %v1030_v5 }
  0x40   :  { %927 = vmatpush3.bf16.msra.mxu0 %v1031_v6 }
  0x41   :  { %949 = vmatpush3.bf16.msra.mxu1 %v1032_v7  ;;  %959 = vmatprep.subr.bf16.mxu0 %v1039_v17 }
  0x43   :  { %669 = vmatmul.mubr.bf16.vlgmr.msra.gmra.mrb[4].mxu0 %v33_v14 }
  0x44   :  { %709 = vmatmul.mubr.bf16.vlgmr.msra.gmra.mrb[4].mxu1 %v35_v15  ;;  %960 = vmatpush3.bf16.msra.mxu0 %v1033_v16 }
  0x45   :  { %961 = vmatprep.subr.bf16.mxu0 %v1039_v17  ;;  %963 = vmatprep.mubr.msk.bf16.mxu0 %vm1040_vm0, %v1039_v17 }
  0x48   :  { %962 = vmatpush3.bf16.msra.mxu0 %v1034_v18 }
  0xf6   :  { %v884_v19 = vpop.f32.mrb[0].mxu0 }
  0xf7   :  { %v906_v20 = vpop.f32.mrb[0].mxu1  ;;  %v885_v22 = vpop.f32.mrb[1].mxu0 }
  0xf8   :  { %v907_v23 = vpop.f32.mrb[1].mxu1  ;;  %v886_v24 = vadd.f32 %v885_v22, %v884_v19  ;;  %v887_v26 = vpop.f32.mrb[2].mxu0 }
  0xf9   :  { %v908_v25 = vadd.f32 %v907_v23, %v906_v20  ;;  %v909_v27 = vpop.f32.mrb[2].mxu1  ;;  %v888_v28 = vpop.f32.mrb[3].mxu0 }
  0xfa   :  { %v910_v29 = vpop.f32.mrb[3].mxu1  ;;  %v591_v30 = vadd.f32 %v886_v24, %v799_v21 }
  0xfc   :  { %v631_v31 = vadd.f32 %v908_v25, %v591_v30 }
 0x116   :  { %v928_v32 = vpop.f32.mrb[4].mxu0 }
 0x117   :  { %v950_v33 = vpop.f32.mrb[4].mxu1  ;;  %v929_v34 = vpop.f32.mrb[5].mxu0 }
 0x118   :  { %v930_v35 = vadd.f32 %v929_v34, %v928_v32  ;;  %v951_v36 = vpop.f32.mrb[5].mxu1  ;;  %v931_v37 = vpop.f32.mrb[6].mxu0 }
 0x119   :  { %v952_v38 = vadd.f32 %v951_v36, %v950_v33  ;;  %v953_v39 = vpop.f32.mrb[6].mxu1  ;;  %v932_v40 = vpop.f32.mrb[7].mxu0 }
 0x11a   :  { %v671_v41 = vadd.f32 %v930_v35, %v631_v31  ;;  %v954_v42 = vpop.f32.mrb[7].mxu1 }
 0x11c   :  { %v711_v43 = vadd.f32 %v952_v38, %v671_v41 }
 0x11e   :  { %v716_v44 = vmax.f32 %v711_v43, 0.0 }
 0x120   :  { %v717_v45 = vpack.c.bf16 %v716_v44, %v716_v44 }
 0x122   :  { %964 = vmatmul.mubr.msk.bf16.vlgmr.msra.gmra.mrb[8].mxu0 %vm741_vm1, %v717_v45 }
 0x1f5   :  { %v779_v47 = vpop.f32.mrb[8].mxu0 }
 0x1f6   :  { %v780_v48 = vadd.f32 %v864_v46, %v779_v47  ;;  %v965_v49 = vpop.f32.mrb[9].mxu0 }
 0x1f7   :  { %v782_v50 = vpop.f32.mrb[10].mxu0 }
 0x1f8   :  { %785 = vmax.xlane.f32.xlu0 %v780_v48  ;;  %v966_v51 = vpop.f32.mrb[11].mxu0 }
 0x285   :  { %v786_v52 = vpop.xlane.xlu0 %785 }
 0x286   :  { %v787_v53 = vsub.f32 %v780_v48, %v786_v52 }
 0x288   :  { %v788_v54 = vmul.f32 1.442695, %v787_v53 }
 0x28a   :  { %1035 = vpow2.f32 %v788_v54 }
 0x294   :  { %v1036_v55 = vpop.eup %1035 }
 0x295   :  { %790 = vadd.xlane.f32.xlu0 %v1036_v55 }
 0x322   :  { %v791_v56 = vpop.xlane.xlu0 %790 }
 0x323   :  { %1037 = vrcp.f32 %v791_v56 }
 0x32d   :  { %v1038_v57 = vpop.eup %1037 }
 0x32e   :  { %v793_v58 = vmul.f32 %v1038_v57, %v1036_v55 }
 0x330   :  { %794 = vst [vmem:[%s1307_s5] sm:$0xff] %v793_v58 }

</bundles_post_ra>
